<compile_context>
chip_gen: v5e
topology: v5e:2x2
jax: 0.10.0
libtpu: 0.0.40
codegen_flags: <defaults>
</compile_context>

<pallas_src>
import jax
import jax.numpy as jnp
from jax.experimental import pallas as pl
from jax.experimental.pallas import tpu as pltpu

B, C, H, W = 2, 128, 6, 7
P = H * W            # 42 — the module's Linear(42, 64) implies H*W == 42
HID = 64


def value_head_kernel(x_ref, wc_ref, w1_ref, b1_ref, w2_ref, scal_ref, o_ref):
    # x_ref:    (bm, P, C)  input block, channels on the 128-lane axis
    # wc_ref:   (1, 1, C)   1x1-conv weight row
    # w1_ref:   (P, HID)    dense1 weight (pre-transposed)
    # b1_ref:   (1, HID)    dense1 bias
    # w2_ref:   (1, HID)    dense2 weight row
    # scal_ref: (2,) SMEM   [conv bias, dense2 bias]
    bc = scal_ref[0]
    b2 = scal_ref[1]

    # 1x1 conv == channel reduction: VPU broadcast-multiply + lane reduce over C=128.
    reduced = jnp.sum(x_ref[...] * wc_ref[...], axis=-1) + bc              # (bm, P)

    # dense1 on the MXU; HIGHEST keeps full f32 accuracy vs. the reference.
    h = jnp.dot(reduced, w1_ref[...],
                preferred_element_type=jnp.float32,
                precision=jax.lax.Precision.HIGHEST) + b1_ref[...]         # (bm, HID)
    h = jnp.maximum(h, 0.0)                                                # ReLU (VPU)

    # dense2 (N=1): broadcast-multiply + lane reduce instead of an N=1 MXU matmul.
    v = jnp.sum(h * w2_ref[...], axis=-1, keepdims=True) + b2              # (bm, 1)
    o_ref[...] = jnp.tanh(v).astype(o_ref.dtype)                           # tanh (EUP)


def value_head_forward(x_nchw, params, *, block_b=128):
    wc, bc, w1, b1, w2, b2 = params
    b, c, h, w = x_nchw.shape
    p = h * w
    hid = w1.shape[0]

    # Layout plumbing (cheap, lane-dense): NCHW -> (B, P, C) so C=128 lands on the
    # lane axis and P follows torch's .view flatten order (h*W + w).
    x_bpc = jnp.transpose(x_nchw.reshape(b, c, p), (0, 2, 1))              # (B, P, C)

    wc_row = wc.reshape(1, 1, c)                                           # (1, 1, C)
    w1_t = w1.T                                                            # (P, HID)
    b1_row = b1.reshape(1, -1)                                             # (1, HID)
    w2_row = w2.reshape(1, -1)                                             # (1, HID)
    scal = jnp.concatenate(
        [bc.reshape(1), b2.reshape(1)]).astype(jnp.float32)                # (2,) SMEM

    bm = min(b, block_b)
    grid = (pl.cdiv(b, bm),)

    out = pl.pallas_call(
        value_head_kernel,
        out_shape=jax.ShapeDtypeStruct((b, 1), x_nchw.dtype),
        grid=grid,
        in_specs=[
            pl.BlockSpec((bm, p, c), lambda i: (i, 0, 0)),        # x tile (pipelined)
            pl.BlockSpec((1, 1, c), lambda i: (0, 0, 0)),         # conv weight
            pl.BlockSpec((p, hid), lambda i: (0, 0)),             # dense1 weight
            pl.BlockSpec((1, hid), lambda i: (0, 0)),             # dense1 bias
            pl.BlockSpec((1, hid), lambda i: (0, 0)),             # dense2 weight
            pl.BlockSpec(memory_space=pltpu.MemorySpace.SMEM),    # scalar biases
        ],
        out_specs=pl.BlockSpec((bm, 1), lambda i: (i, 0)),
        compiler_params=pltpu.CompilerParams(
            dimension_semantics=("parallel",)),   # shards batch blocks over v7x's 2 TCs
    )(x_bpc, wc_row, w1_t, b1_row, w2_row, scal)
    return out                                                             # (B, 1)


def value_head_ref(x_nchw, params):
    # Plain-JAX reference mirroring the PyTorch forward exactly.
    wc, bc, w1, b1, w2, b2 = params
    b, c, h, w = x_nchw.shape
    hp = jax.lax.Precision.HIGHEST
    reduced = jnp.einsum('bchw,oc->bohw', x_nchw, wc.reshape(1, c), precision=hp) \
        + bc.reshape(1, 1, 1, 1)                                        # Conv2d(128,1,1)
    flat = reduced.reshape(b, -1)                                       # view(B, -1) -> (B, 42)
    x1 = jnp.maximum(jnp.dot(flat, w1.T, precision=hp) + b1, 0.0)       # Linear(42,64) + ReLU
    return jnp.tanh(jnp.dot(x1, w2.T, precision=hp) + b2)               # Linear(64,1) + tanh


def init_params(key):
    ks = jax.random.split(key, 6)
    wc = jax.random.normal(ks[0], (1, C), jnp.float32) * (1.0 / jnp.sqrt(C))
    bc = jax.random.normal(ks[1], (1,), jnp.float32) * 0.01
    w1 = jax.random.normal(ks[2], (HID, P), jnp.float32) * (1.0 / jnp.sqrt(P))
    b1 = jax.random.normal(ks[3], (HID,), jnp.float32) * 0.01
    w2 = jax.random.normal(ks[4], (1, HID), jnp.float32) * (1.0 / jnp.sqrt(HID))
    b2 = jax.random.normal(ks[5], (1,), jnp.float32) * 0.01
    return (wc, bc, w1, b1, w2, b2)


if __name__ == "__main__":
    key = jax.random.PRNGKey(0)
    k_x, k_p = jax.random.split(key)
    x = jax.random.normal(k_x, (B, C, H, W), jnp.float32)   # NCHW, like PyTorch
    params = init_params(k_p)

    fwd = jax.jit(value_head_forward)
    out = jax.block_until_ready(fwd(x, params))

    ref = value_head_ref(x, params)
    assert out.shape == (B, 1), out.shape
    assert jnp.allclose(out, ref, atol=2e-5, rtol=1e-5), (out, ref)

    print("KERNEL_OK")
</pallas_src>

<mosaic_0001>
module attributes {stable_mosaic.version = 11 : i64} {
  func.func @value_head_kernel(%arg0: i32, %arg1: memref<2x42x128xf32, #tpu.memory_space<vmem>>, %arg2: memref<1x1x128xf32, #tpu.memory_space<vmem>>, %arg3: memref<42x64xf32, #tpu.memory_space<vmem>>, %arg4: memref<1x64xf32, #tpu.memory_space<vmem>>, %arg5: memref<1x64xf32, #tpu.memory_space<vmem>>, %arg6: memref<2xf32, #tpu.memory_space<smem>>, %arg7: memref<2x1xf32, #tpu.memory_space<vmem>>) attributes {dimension_semantics = [#tpu.dimension_semantics<parallel>], iteration_bounds = array<i64: 1>, scalar_prefetch = 0 : i64, scratch_operands = 0 : i64, tpu.core_type = #tpu.core_type<tc>, window_params = [{transform_indices = @transform_0, window_bounds = array<i64: 2, 42, 128>}, {pipeline_mode = #tpu.pipeline_mode<synchronous>, transform_indices = @transform_1, window_bounds = array<i64: 1, 1, 128>}, {pipeline_mode = #tpu.pipeline_mode<synchronous>, transform_indices = @transform_2, window_bounds = array<i64: 42, 64>}, {pipeline_mode = #tpu.pipeline_mode<synchronous>, transform_indices = @transform_3, window_bounds = array<i64: 1, 64>}, {pipeline_mode = #tpu.pipeline_mode<synchronous>, transform_indices = @transform_4, window_bounds = array<i64: 1, 64>}, {transform_indices = @transform_5, window_bounds = array<i64: 2>}, {transform_indices = @transform_6, window_bounds = array<i64: 2, 1>}]} {
    %c0 = arith.constant 0 : index
    %0 = memref.load %arg6[%c0] : memref<2xf32, #tpu.memory_space<smem>>
    %c1 = arith.constant 1 : index
    %1 = memref.load %arg6[%c1] : memref<2xf32, #tpu.memory_space<smem>>
    %c0_0 = arith.constant 0 : index
    %c0_1 = arith.constant 0 : index
    %c0_2 = arith.constant 0 : index
    %2 = vector.load %arg1[%c0_0, %c0_1, %c0_2] : memref<2x42x128xf32, #tpu.memory_space<vmem>>, vector<2x42x128xf32>
    %c0_3 = arith.constant 0 : index
    %c0_4 = arith.constant 0 : index
    %c0_5 = arith.constant 0 : index
    %3 = vector.load %arg2[%c0_3, %c0_4, %c0_5] : memref<1x1x128xf32, #tpu.memory_space<vmem>>, vector<1x1x128xf32>
    %4 = vector.broadcast %3 : vector<1x1x128xf32> to vector<2x42x128xf32>
    %5 = arith.mulf %2, %4 : vector<2x42x128xf32>
    %cst = arith.constant dense<0.000000e+00> : vector<2x42xf32>
    %6 = vector.multi_reduction <add>, %5, %cst [2] : vector<2x42x128xf32> to vector<2x42xf32>
    %7 = vector.broadcast %0 : f32 to vector<2x42xf32>
    %8 = arith.addf %6, %7 : vector<2x42xf32>
    %c0_6 = arith.constant 0 : index
    %c0_7 = arith.constant 0 : index
    %9 = vector.load %arg3[%c0_6, %c0_7] : memref<42x64xf32, #tpu.memory_space<vmem>>, vector<42x64xf32>
    %cst_8 = arith.constant dense<0.000000e+00> : vector<2x64xf32>
    %10 = tpu.matmul %8, %9, %cst_8 {dimension_numbers = #tpu.dot_dimension_numbers<[1], [0], [0], [1], [0, 0, 1, 1], [], []>, precision = #tpu.contract_precision<fp32>} : vector<2x42xf32>, vector<42x64xf32>, vector<2x64xf32> -> vector<2x64xf32>
    %c0_9 = arith.constant 0 : index
    %c0_10 = arith.constant 0 : index
    %11 = vector.load %arg4[%c0_9, %c0_10] : memref<1x64xf32, #tpu.memory_space<vmem>>, vector<1x64xf32>
    %12 = vector.broadcast %11 : vector<1x64xf32> to vector<2x64xf32>
    %13 = arith.addf %10, %12 : vector<2x64xf32>
    %cst_11 = arith.constant 0.000000e+00 : f32
    %14 = vector.broadcast %cst_11 : f32 to vector<2x64xf32>
    %15 = arith.maximumf %13, %14 : vector<2x64xf32>
    %c0_12 = arith.constant 0 : index
    %c0_13 = arith.constant 0 : index
    %16 = vector.load %arg5[%c0_12, %c0_13] : memref<1x64xf32, #tpu.memory_space<vmem>>, vector<1x64xf32>
    %17 = vector.broadcast %16 : vector<1x64xf32> to vector<2x64xf32>
    %18 = arith.mulf %15, %17 : vector<2x64xf32>
    %cst_14 = arith.constant dense<0.000000e+00> : vector<2xf32>
    %19 = vector.multi_reduction <add>, %18, %cst_14 [1] : vector<2x64xf32> to vector<2xf32>
    %20 = vector.shape_cast %19 : vector<2xf32> to vector<2x1xf32>
    %21 = vector.broadcast %1 : f32 to vector<2x1xf32>
    %22 = arith.addf %20, %21 : vector<2x1xf32>
    %23 = math.tanh %22 : vector<2x1xf32>
    %c0_15 = arith.constant 0 : index
    %c0_16 = arith.constant 0 : index
    %24 = vector.load %arg7[%c0_15, %c0_16] : memref<2x1xf32, #tpu.memory_space<vmem>>, vector<2x1xf32>
    tpu.vector_store %arg7[%c0_15, %c0_16], %23 {strides = array<i32>} : memref<2x1xf32, #tpu.memory_space<vmem>>, vector<2x1xf32>,
    return
  }
  func.func @transform_0(%arg0: i32) -> (i32, i32, i32) {
    %c0_i32 = arith.constant 0 : i32
    %c0_i32_0 = arith.constant 0 : i32
    %c0_i32_1 = arith.constant 0 : i32
    return %arg0, %c0_i32, %c0_i32_0 : i32, i32, i32
  }
  func.func @transform_1(%arg0: i32) -> (i32, i32, i32) {
    %c0_i32 = arith.constant 0 : i32
    %c0_i32_0 = arith.constant 0 : i32
    %c0_i32_1 = arith.constant 0 : i32
    %c0_i32_2 = arith.constant 0 : i32
    return %c0_i32, %c0_i32_0, %c0_i32_1 : i32, i32, i32
  }
  func.func @transform_2(%arg0: i32) -> (i32, i32) {
    %c0_i32 = arith.constant 0 : i32
    %c0_i32_0 = arith.constant 0 : i32
    %c0_i32_1 = arith.constant 0 : i32
    return %c0_i32, %c0_i32_0 : i32, i32
  }
  func.func @transform_3(%arg0: i32) -> (i32, i32) {
    %c0_i32 = arith.constant 0 : i32
    %c0_i32_0 = arith.constant 0 : i32
    %c0_i32_1 = arith.constant 0 : i32
    return %c0_i32, %c0_i32_0 : i32, i32
  }
  func.func @transform_4(%arg0: i32) -> (i32, i32) {
    %c0_i32 = arith.constant 0 : i32
    %c0_i32_0 = arith.constant 0 : i32
    %c0_i32_1 = arith.constant 0 : i32
    return %c0_i32, %c0_i32_0 : i32, i32
  }
  func.func @transform_5(%arg0: i32) -> i32 {
    %c0_i32 = arith.constant 0 : i32
    %c0_i32_0 = arith.constant 0 : i32
    return %c0_i32 : i32
  }
  func.func @transform_6(%arg0: i32) -> (i32, i32) {
    %c0_i32 = arith.constant 0 : i32
    %c0_i32_0 = arith.constant 0 : i32
    return %arg0, %c0_i32 : i32, i32
  }
}

</mosaic_0001>

<bundles_post_ra>
// kernel: value_head_forward.1
= control target key start
LH: loop header
LB: loop body
LE: loop exit
PB: predicated region body
PF: predicated region fallthrough
CT: control target
= control target key end

     0   :  { %11 = vsyncpa [#allocation3], 0  ;;  %s422_s24 = smov [#allocation2]   ;;  %s540_s0 = inlined_call_operand.vmem [shape: f32[2,42,128], index: 0, kind: input, shape index: {}]   ;;  %s541_s1 = inlined_call_operand.vmem [shape: f32[1,1,128], index: 1, kind: input, shape index: {}]   ;;  %s542_s2 = inlined_call_operand.vmem [shape: f32[42,64], index: 2, kind: input, shape index: {}]   ;;  %s543_s3 = inlined_call_operand.vmem [shape: f32[1,64], index: 3, kind: input, shape index: {}]   ;;  %s544_s4 = inlined_call_operand.vmem [shape: f32[1,64], index: 4, kind: input, shape index: {}]   ;;  %s545_s5 = inlined_call_operand.vmem [shape: f32[2], index: 5, kind: input, shape index: {}]   ;;  %s546_s6 = inlined_call_operand.vmem [shape: f32[2,1], index: 6, kind: output, shape index: {}]  }
   0x1   :  { %s27_s23 = sshll.u32 %s545_s5, 4  ;;  %s28_s23 = int_to_ptr.vmem [resolvable:$true] %s27_s23 }
   0x2   :  { %30 = dma.vmem_to_smem %s28_s23, 16, %s422_s24, [#allocation3]  }
   0x3   :  { %420 = dma.done.wait [#allocation3], 16  }
   0x4   :  { %421 = vsyncadd [#allocation3], 4294967280 }
   0x5   :  { %35 = sfence }
   0x6   :  { %v44_v0 = vld [vmem:[%s540_s0 + $0x30] sm:$0xff]  ;;  %v403_v1 = vld [vmem:[%s541_s1] ss:$0 sm:$0xff]  ;;  %v45_v7 = vld [vmem:[%s540_s0 + $0x38] sm:$0xff]  ;;  %vm76_vm0 = vcmask 1041408   ;;  %vm133_vm1 = vcmask 130112  }
   0x7   :  { %v38_v2 = vld [vmem:[%s540_s0] sm:$0xff]  ;;  %v40_v3 = vld [vmem:[%s540_s0 + $0x10] sm:$0xff]  ;;  %v60_v4 = vmul.f32 %v403_v1, %v44_v0  ;;  %v111_v8 = vld [vmem:[%s542_s2 + $0x28] sm:$0x3]  ;;  %v61_v13 = vmul.f32 %v403_v1, %v45_v7  ;;  %vm137_vm2 = vcmask 195712   ;;  %vm141_vm3 = vcmask 261312  }
   0x8   :  { %v54_v5 = vmul.f32 %v403_v1, %v38_v2  ;;  %v56_v6 = vmul.f32 %v403_v1, %v40_v3  ;;  %v39_v9 = vld [vmem:[%s540_s0 + $0x8] sm:$0xff]  ;;  %v168_v10 = vsel %vm76_vm0, %v111_v8, 0  ;;  %v46_v11 = vld [vmem:[%s540_s0 + $0x40] sm:$0xff]  ;;  %v41_v17 = vld [vmem:[%s540_s0 + $0x18] sm:$0xff]  ;;  %v128_v3 = vlaneseq }
   0x9   :  { %80 = vadd.xlane.f32.xlu1 %v60_v4  ;;  %v486_v12 = vand.u32 4294901760, %v168_v10  ;;  %v55_v14 = vmul.f32 %v403_v1, %v39_v9  ;;  %v62_v15 = vmul.f32 %v403_v1, %v46_v11  ;;  %v47_v16 = vld [vmem:[%s540_s0 + $0x48] sm:$0xff]  ;;  %v42_v18 = vld [vmem:[%s540_s0 + $0x20] sm:$0xff]  ;;  %v57_v20 = vmul.f32 %v403_v1, %v41_v17  ;;  %v49_v23 = vld [vmem:[%s540_s0 + $0x58] sm:$0x3] }
   0xa   :  { %66 = vadd.xlane.f32.xlu0 %v54_v5  ;;  %70 = vadd.xlane.f32.xlu2 %v56_v6  ;;  %v63_v19 = vmul.f32 %v403_v1, %v47_v16  ;;  %v58_v21 = vmul.f32 %v403_v1, %v42_v18  ;;  %v43_v22 = vld [vmem:[%s540_s0 + $0x28] sm:$0x3]  ;;  %v48_v25 = vld [vmem:[%s540_s0 + $0x50] sm:$0xff]  ;;  %v65_v26 = vmul.f32 %v403_v1, %v49_v23  ;;  %v110_v30 = vld [vmem:[%s542_s2 + $0x20] sm:$0xff]  ;;  %v129_v7 = vand.u32 127, %v128_v3 }
   0xb   :  { %297 = vmatpush.msra.mxu3 %v486_v12  ;;  %181 = vmatpush.msra.mxu0 %v486_v12  ;;  %v59_v24 = vmul.f32 %v403_v1, %v43_v22  ;;  %v64_v27 = vmul.f32 %v403_v1, %v48_v25  ;;  %v212_v31 = vsub.f32 %v168_v10, %v486_v12  ;;  %v182_v32 = vand.u32 4294901760, %v110_v30  ;;  %v109_v33 = vld [vmem:[%s542_s2 + $0x18] sm:$0xff]  ;;  %v108_v37 = vld [vmem:[%s542_s2 + $0x10] sm:$0xff]  ;;  %v107_v42 = vld [vmem:[%s542_s2 + $0x8] sm:$0xff] }
   0xc   :  { %v90_v29 = vsel %vm76_vm0, %v65_v26, 0.0  ;;  %v184_v36 = vand.u32 4294901760, %v109_v33  ;;  %v186_v41 = vand.u32 4294901760, %v108_v37  ;;  %v188_v47 = vand.u32 4294901760, %v107_v42  ;;  %v106_v48 = vld [vmem:[%s542_s2] sm:$0xff]  ;;  %s36_s2 = sld [smem:[#allocation2]] }
   0xd   :  { %v77_v28 = vsel %vm76_vm0, %v59_v24, 0.0  ;;  %v213_v34 = vand.u32 4294901760, %v212_v31  ;;  %v218_v35 = vsub.f32 %v110_v30, %v182_v32  ;;  %264 = vmatpush.msra.mxu2 %v212_v31  ;;  %299 = vmatpush.msra.mxu3 %v182_v32  ;;  %v190_v53 = vand.u32 4294901760, %v106_v48 }
   0xe   :  { %183 = vmatpush.msra.mxu0 %v182_v32  ;;  %v224_v40 = vsub.f32 %v109_v33, %v184_v36  ;;  %v230_v46 = vsub.f32 %v108_v37, %v186_v41  ;;  %v236_v52 = vsub.f32 %v107_v42, %v188_v47  ;;  %v131_v9 = vadd.s32 4294967288, %v129_v7 }
   0xf   :  { %v214_v38 = vsub.f32 %v212_v31, %v213_v34  ;;  %v219_v39 = vand.u32 4294901760, %v218_v35  ;;  %267 = vmatpush.msra.mxu2 %v218_v35  ;;  %301 = vmatpush.msra.mxu3 %v184_v36  ;;  %v242_v57 = vsub.f32 %v106_v48, %v190_v53  ;;  %v139_v16 = vadd.s32 4294967272, %v129_v7 }
  0x10   :  { %185 = vmatpush.msra.mxu0 %v184_v36  ;;  %v225_v45 = vand.u32 4294901760, %v224_v40  ;;  %v231_v51 = vand.u32 4294901760, %v230_v46  ;;  %v237_v56 = vand.u32 4294901760, %v236_v52  ;;  %v143_v26 = vadd.s32 4294967264, %v129_v7 }
  0x11   :  { %82 = vadd.xlane.f32.xlu1 %v61_v13  ;;  %v215_v43 = vand.u32 4294901760, %v214_v38  ;;  %v220_v44 = vsub.f32 %v218_v35, %v219_v39  ;;  %270 = vmatpush.msra.mxu2 %v224_v40  ;;  %v243_v60 = vand.u32 4294901760, %v242_v57  ;;  %v147_v33 = vadd.s32 4294967256, %v129_v7 }
  0x12   :  { %68 = vadd.xlane.f32.xlu0 %v55_v14  ;;  %84 = vadd.xlane.f32.xlu2 %v62_v15  ;;  %v226_v50 = vsub.f32 %v224_v40, %v225_v45  ;;  %v232_v55 = vsub.f32 %v230_v46, %v231_v51  ;;  %v238_v59 = vsub.f32 %v236_v52, %v237_v56  ;;  %v93_v8 = vstv %s36_s2 }
  0x13   :  { %303 = vmatpush.msra.mxu3 %v186_v41  ;;  %187 = vmatpush.msra.mxu0 %v186_v41  ;;  %v221_v49 = vand.u32 4294901760, %v220_v44  ;;  %v244_v62 = vsub.f32 %v242_v57, %v243_v60  ;;  %vm145_vm4 = vcmask 326912   ;;  %vm149_vm5 = vcmask 392512  }
  0x14   :  { %216 = vmatpush.msra.mxu1 %v215_v43  ;;  %273 = vmatpush.msra.mxu2 %v230_v46  ;;  %v227_v54 = vand.u32 4294901760, %v226_v50  ;;  %v233_v58 = vand.u32 4294901760, %v232_v55  ;;  %v239_v61 = vand.u32 4294901760, %v238_v59  ;;  %vm162_vm6 = vcmask 1041409  }
  0x15   :  { %305 = vmatpush.msra.mxu3 %v188_v47  ;;  %189 = vmatpush.msra.mxu0 %v188_v47  ;;  %v245_v63 = vand.u32 4294901760, %v244_v62  ;;  %vm164_vm7 = vcmask 343040   ;;  %vm387_vm8 = vcmask 517120   ;;  %vm394_vm9 = vcmask 1024  }
  0x16   :  { %222 = vmatpush.msra.mxu1 %v221_v49  ;;  %276 = vmatpush.msra.mxu2 %v236_v52 }
  0x17   :  { %307 = vmatpush.msra.mxu3 %v190_v53  ;;  %191 = vmatpush.msra.mxu0 %v190_v53 }
  0x18   :  { %228 = vmatpush.msra.mxu1 %v227_v54  ;;  %279 = vmatpush.msra.mxu2 %v242_v57 }
  0x19   :  { %86 = vadd.xlane.f32.xlu1 %v63_v19  ;;  %328 = vmatpush.msrb.mxu0 %v213_v34 }
  0x1a   :  { %72 = vadd.xlane.f32.xlu0 %v57_v20  ;;  %74 = vadd.xlane.f32.xlu2 %v58_v21  ;;  %v135_v20 = vadd.s32 4294967280, %v129_v7 }
  0x1b   :  { %234 = vmatpush.msra.mxu1 %v233_v58  ;;  %332 = vmatpush.msrb.mxu0 %v219_v39 }
  0x1d   :  { %240 = vmatpush.msra.mxu1 %v239_v61  ;;  %336 = vmatpush.msrb.mxu0 %v225_v45  ;;  %v404_v61 = vld [vmem:[%s543_s3] ss:$0 sm:$0xff]  ;;  %s401_s3 = sld [smem:[#allocation2 + $0x1]] }
  0x1f   :  { %246 = vmatpush.msra.mxu1 %v245_v63  ;;  %340 = vmatpush.msrb.mxu0 %v231_v51 }
  0x21   :  { %78 = vadd.xlane.f32.xlu1 %v77_v28  ;;  %365 = vmatpush.msrb.mxu1 %v486_v12 }
  0x22   :  { %88 = vadd.xlane.f32.xlu0 %v64_v27  ;;  %91 = vadd.xlane.f32.xlu2 %v90_v29 }
  0x23   :  { %344 = vmatpush.msrb.mxu0 %v237_v56  ;;  %367 = vmatpush.msrb.mxu1 %v182_v32 }
  0x25   :  { %348 = vmatpush.msrb.mxu0 %v243_v60  ;;  %369 = vmatpush.msrb.mxu1 %v184_v36 }
  0x27   :  { %371 = vmatpush.msrb.mxu1 %v186_v41 }
  0x29   :  { %373 = vmatpush.msrb.mxu1 %v188_v47 }
  0x2b   :  { %375 = vmatpush.msrb.mxu1 %v190_v53 }
  0x7c   :  { %v81_v0 = vpop.xlane.xlu1 %80 }
  0x7d   :  { %v67_v1 = vpop.xlane.xlu0 %66  ;;  %v71_v2 = vpop.xlane.xlu2 %70  ;;  %v100_v19 = vadd.f32 %v93_v8, %v81_v0 }
  0x7e   :  { %v94_v11 = vadd.f32 %v93_v8, %v67_v1  ;;  %v96_v21 = vadd.f32 %v93_v8, %v71_v2 }
  0x7f   :  { %v151_v30 = vperm.slane %v100_v19, %v129_v7 }
  0x80   :  { %v130_v22 = vperm.slane %v94_v11, %v129_v7  ;;  %v136_v31 = vperm.slane %v96_v21, %v135_v20 }
  0x84   :  { %v83_v4 = vpop.xlane.xlu1 %82 }
  0x85   :  { %v69_v5 = vpop.xlane.xlu0 %68  ;;  %v85_v6 = vpop.xlane.xlu2 %84  ;;  %v101_v13 = vadd.f32 %v93_v8, %v83_v4 }
  0x86   :  { %v95_v10 = vadd.f32 %v93_v8, %v69_v5  ;;  %v102_v23 = vadd.f32 %v93_v8, %v85_v6 }
  0x87   :  { %v152_v24 = vperm.slane %v101_v13, %v131_v9 }
  0x88   :  { %v132_v15 = vperm.slane %v95_v10, %v131_v9  ;;  %v154_v32 = vperm.slane %v102_v23, %v135_v20  ;;  %v405_v10 = vld [vmem:[%s544_s4] ss:$0 sm:$0xff] }
  0x89   :  { %v153_v34 = vsel %vm133_vm1, %v152_v24, %v151_v30 }
  0x8a   :  { %v134_v28 = vsel %vm133_vm1, %v132_v15, %v130_v22  ;;  %v155_v45 = vsel %vm137_vm2, %v154_v32, %v153_v34 }
  0x8b   :  { %v138_v36 = vsel %vm137_vm2, %v136_v31, %v134_v28 }
  0x8c   :  { %v87_v14 = vpop.xlane.xlu1 %86 }
  0x8d   :  { %v73_v12 = vpop.xlane.xlu0 %72  ;;  %v75_v18 = vpop.xlane.xlu2 %74  ;;  %v103_v25 = vadd.f32 %v93_v8, %v87_v14 }
  0x8e   :  { %v97_v17 = vadd.f32 %v93_v8, %v73_v12  ;;  %v98_v27 = vadd.f32 %v93_v8, %v75_v18  ;;  %v391_v12 = vstv %s401_s3 }
  0x8f   :  { %v156_v35 = vperm.slane %v103_v25, %v139_v16 }
  0x90   :  { %v140_v29 = vperm.slane %v97_v17, %v139_v16  ;;  %v144_v37 = vperm.slane %v98_v27, %v143_v26 }
  0x91   :  { %v157_v48 = vsel %vm141_vm3, %v156_v35, %v155_v45 }
  0x92   :  { %v142_v40 = vsel %vm141_vm3, %v140_v29, %v138_v36 }
  0x93   :  { %v146_v49 = vsel %vm145_vm4, %v144_v37, %v142_v40 }
  0x94   :  { %v79_v38 = vpop.xlane.xlu1 %78 }
  0x95   :  { %v89_v39 = vpop.xlane.xlu0 %88  ;;  %v99_v41 = vadd.f32 %v93_v8, %v79_v38  ;;  %v92_v43 = vpop.xlane.xlu2 %91 }
  0x96   :  { %v104_v42 = vadd.f32 %v93_v8, %v89_v39  ;;  %v105_v44 = vadd.f32 %v93_v8, %v92_v43 }
  0x97   :  { %v148_v46 = vperm.slane %v99_v41, %v147_v33 }
  0x98   :  { %v158_v47 = vperm.slane %v104_v42, %v143_v26  ;;  %v160_v50 = vperm.slane %v105_v44, %v147_v33 }
  0x99   :  { %v150_v51 = vsel %vm149_vm5, %v148_v46, %v146_v49 }
  0x9a   :  { %v159_v52 = vsel %vm145_vm4, %v158_v47, %v157_v48 }
  0x9b   :  { %v161_v53 = vsel %vm149_vm5, %v160_v50, %v159_v52 }
  0x9c   :  { %v163_v54 = vsel %vm162_vm6, %v161_v53, %v150_v51 }
  0x9d   :  { %v165_v55 = vsel %vm164_vm7, %v163_v54, 0 }
  0x9e   :  { %v192_v56 = vand.u32 4294901760, %v165_v55 }
  0xa0   :  { %248 = vmatmul.f32.vlgmr.msra.gmra.mxu1 %v192_v56  ;;  %v193_v57 = vsub.f32 %v165_v55, %v192_v56 }
  0xa2   :  { %282 = vmatmul.f32.vlgmr.msra.gmra.mxu2 %v193_v57  ;;  %v194_v58 = vand.u32 4294901760, %v193_v57 }
  0xa4   :  { %311 = vmatmul.f32.vlgmr.msra.gmra.mxu3 %v194_v58  ;;  %v195_v59 = vsub.f32 %v193_v57, %v194_v58 }
  0xa6   :  { %v196_v60 = vand.u32 4294901760, %v195_v59 }
  0xa8   :  { %197 = vmatmul.f32.vlgmr.msra.gmra.mxu0 %v196_v60  ;;  %377 = vmatmul.f32.vlgmr.msrb.gmra.mxu1 %v192_v56 }
  0xb0   :  { %350 = vmatmul.f32.vlgmr.msrb.gmra.mxu0 %v192_v56 }
 0x11d   :  { %v249_v62 = vpop.f32.mrf.mxu1 }
 0x125   :  { %v198_v63 = vpop.f32.mrf.mxu0  ;;  %v283_v2 = vpop.f32.mrf.mxu2 }
 0x126   :  { %v199_v0 = vadd.f32 %v404_v61, %v198_v63  ;;  %v378_v8 = vpop.f32.mrf.mxu1 }
 0x127   :  { %v312_v4 = vpop.f32.mrf.mxu3 }
 0x128   :  { %v250_v1 = vadd.f32 %v249_v62, %v199_v0 }
 0x12a   :  { %v284_v3 = vadd.f32 %v283_v2, %v250_v1 }
 0x12c   :  { %v313_v5 = vadd.f32 %v312_v4, %v284_v3 }
 0x12d   :  { %v351_v6 = vpop.f32.mrf.mxu0 }
 0x12e   :  { %v352_v7 = vadd.f32 %v351_v6, %v313_v5 }
 0x130   :  { %v379_v9 = vadd.f32 %v378_v8, %v352_v7 }
 0x132   :  { %v381_v11 = vmax.f32 %v379_v9, 0.0 }
 0x134   :  { %v386_v13 = vmul.f32 %v405_v10, %v381_v11 }
 0x136   :  { %v388_v14 = vsel %vm387_vm8, %v386_v13, 0.0 }
 0x137   :  { %389 = vadd.xlane.f32.xlu0 %v388_v14 }
 0x1aa   :  { %v390_v15 = vpop.xlane.xlu0 %389 }
 0x1ab   :  { %v392_v16 = vadd.f32 %v391_v12, %v390_v15 }
 0x1ad   :  { %406 = vtanh.f32 %v392_v16 }
 0x1b3   :  { %v407_v17 = vpop.eup %406 }
 0x1b4   :  { %395 = vst.msk [vmem:[%s546_s6] sm:$0x3] %vm394_vm9, %v407_v17 }
 0x1b5   :  { %400 = vsyncpa [#allocation3], 1 }

</bundles_post_ra>
